<compile_context>
chip_gen: v5e
topology: v5e:2x2
jax: 0.10.0
libtpu: 0.0.40
codegen_flags: <defaults>
</compile_context>

<pallas_src>
import functools

import jax
import jax.numpy as jnp
from jax.experimental import pallas as pl
from jax.experimental.pallas import tpu as pltpu


def _mlp_kernel(x_ref, w1_ref, b1_ref, w2_ref, b2_ref, w3_ref, b3_ref, o_ref):
    """Fused 3-layer MLP: relu(x@W1+b1) -> relu(@W2+b2) -> (@W3+b3).

    x arrives in f32 straight from HBM (no wrapper pad+cast pass); the bf16 cast is
    VPU work that hides under the DMA bound. Matmuls accumulate in f32, the
    bias-add / ReLU epilogue stays in f32 (v5e has no bf16 VPU ALUs).
    """
    x = x_ref[...].astype(jnp.bfloat16)

    h1 = jnp.dot(x, w1_ref[...], preferred_element_type=jnp.float32) + b1_ref[...]
    h1 = jnp.maximum(h1, 0.0).astype(jnp.bfloat16)

    h2 = jnp.dot(h1, w2_ref[...], preferred_element_type=jnp.float32) + b2_ref[...]
    h2 = jnp.maximum(h2, 0.0).astype(jnp.bfloat16)

    o_ref[...] = (
        jnp.dot(h2, w3_ref[...], preferred_element_type=jnp.float32) + b3_ref[...]
    ).astype(o_ref.dtype)


def _round_up(v, m):
    return (v + m - 1) // m * m


@functools.partial(jax.jit, static_argnames=("block_m",))
def genre_classifier_forward(x, w1, b1, w2, b2, w3, b3, *, block_m=8192):
    """x: [..., output_size] (any leading dims), flattened like torch .view(-1, output_size).

    Weights are stored transposed vs. PyTorch, i.e. [in_features, out_features].
    """
    in_dim, d1 = w1.shape
    d2 = w2.shape[1]
    d3 = w3.shape[1]

    x2d = x.reshape(-1, in_dim).astype(jnp.float32)   # same as torch .view(-1, output_size)
    m = x2d.shape[0]

    # Batch tile: multiple of 16 (bf16 packs 16 rows per sublane group), never
    # larger than the rounded-up batch.
    bm = min(block_m, _round_up(m, 16))
    bm = max(16, bm - bm % 16)
    # Guarantee >= 2 grid steps for medium batches so the "parallel" grid axis can
    # shard across v7x's two TensorCores instead of collapsing to a single step.
    if _round_up(m, bm) == bm and bm >= 128:
        bm = max(16, _round_up((bm + 1) // 2, 16))
    m_pad = _round_up(m, bm)

    # Narrow output: pad the class dim only 10 -> 16. Stores lower to masked
    # vst.msk, which is fine — the binding resource is HBM writeback bytes.
    d3_pad = _round_up(d3, 16)

    # Pad the batch with zero rows only when needed (sliced off below).
    if m_pad != m:
        x2d = jnp.pad(x2d, ((0, m_pad - m), (0, 0)))

    cdt = jnp.bfloat16
    w1b = w1.astype(cdt)
    w2b = w2.astype(cdt)
    w3b = jnp.zeros((d2, d3_pad), cdt).at[:, :d3].set(w3.astype(cdt))
    # Biases stay f32 (f32 epilogue) as (1, dim) rows for clean broadcasting.
    b1r = b1.reshape(1, d1).astype(jnp.float32)
    b2r = b2.reshape(1, d2).astype(jnp.float32)
    b3r = jnp.zeros((1, d3_pad), jnp.float32).at[:, :d3].set(b3.astype(jnp.float32))

    grid = (m_pad // bm,)

    flops = 2 * m_pad * (in_dim * d1 + d1 * d2 + d2 * d3_pad)
    bytes_accessed = (
        m_pad * in_dim * 4                                  # f32 x read
        + (w1b.size + w2b.size + w3b.size) * 2              # bf16 weights
        + (b1r.size + b2r.size + b3r.size) * 4              # f32 biases
        + m_pad * d3_pad * 2                                 # bf16 output writeback
    )

    out_padded = pl.pallas_call(
        _mlp_kernel,
        out_shape=jax.ShapeDtypeStruct((m_pad, d3_pad), jnp.bfloat16),
        grid_spec=pltpu.PrefetchScalarGridSpec(
            num_scalar_prefetch=0,
            grid=grid,
            in_specs=[
                # activations: tile over batch rows (f32, cast on-core)
                pl.BlockSpec((bm, in_dim), lambda i: (i, 0)),
                # weights / biases: whole array, same block every grid step (resident)
                pl.BlockSpec((in_dim, d1), lambda i: (0, 0)),
                pl.BlockSpec((1, d1), lambda i: (0, 0)),
                pl.BlockSpec((d1, d2), lambda i: (0, 0)),
                pl.BlockSpec((1, d2), lambda i: (0, 0)),
                pl.BlockSpec((d2, d3_pad), lambda i: (0, 0)),
                pl.BlockSpec((1, d3_pad), lambda i: (0, 0)),
            ],
            out_specs=pl.BlockSpec((bm, d3_pad), lambda i: (i, 0)),
        ),
        compiler_params=pltpu.CompilerParams(
            dimension_semantics=("parallel",),   # batch tiles shard across TCs on v7x
            vmem_limit_bytes=32 * 1024 * 1024,   # large tiles safe on v5e/v6e/v7x
        ),
        cost_estimate=pl.CostEstimate(
            flops=flops, transcendentals=0, bytes_accessed=bytes_accessed
        ),
    )(x2d, w1b, b1r, w2b, b2r, w3b, b3r)

    # Strip batch padding and the class-dim padding; restore f32 like the torch module.
    return out_padded[:m, :d3].astype(jnp.float32)


def _init_linear(key, fan_in, fan_out):
    """PyTorch nn.Linear default init: U(-1/sqrt(fan_in), 1/sqrt(fan_in)).
    Weight stored as [in, out] (transposed vs. torch's [out, in])."""
    kw, kb = jax.random.split(key)
    bound = 1.0 / (fan_in ** 0.5)
    w = jax.random.uniform(kw, (fan_in, fan_out), jnp.float32, -bound, bound)
    b = jax.random.uniform(kb, (fan_out,), jnp.float32, -bound, bound)
    return w, b


def _reference(x, w1, b1, w2, b2, w3, b3):
    """Plain-JAX reference mirroring the kernel's bf16-in / f32-accumulate numerics."""
    x2d = x.reshape(-1, w1.shape[0])
    cdt = jnp.bfloat16
    h1 = jnp.dot(x2d.astype(cdt), w1.astype(cdt),
                 preferred_element_type=jnp.float32) + b1
    h1 = jnp.maximum(h1, 0.0).astype(cdt)
    h2 = jnp.dot(h1, w2.astype(cdt), preferred_element_type=jnp.float32) + b2
    h2 = jnp.maximum(h2, 0.0).astype(cdt)
    return jnp.dot(h2, w3.astype(cdt), preferred_element_type=jnp.float32) + b3


if __name__ == "__main__":
    # Small shapes consistent with the module:
    #   output_size=32, first_fc_dim=128, second_fc_dim=64, num_classes=10
    output_size = 32
    first_fc_dim = 128
    second_fc_dim = 64
    num_classes = 10

    root = jax.random.PRNGKey(0)
    kx1, kx2, k1, k2, k3 = jax.random.split(root, 5)

    w1, b1 = _init_linear(k1, output_size, first_fc_dim)
    w2, b2 = _init_linear(k2, first_fc_dim, second_fc_dim)
    w3, b3 = _init_linear(k3, second_fc_dim, num_classes)

    # Case 1: tiny batch, single grid step (exercises small-tile clamp + batch pad).
    #   encoder-like output [3, 4, 8] -> view(-1, 32) gives 3 rows.
    x_a = jax.random.normal(kx1, (3, 4, 8), jnp.float32)
    out_a = genre_classifier_forward(x_a, w1, b1, w2, b2, w3, b3)
    out_a = jax.block_until_ready(out_a)
    ref_a = _reference(x_a, w1, b1, w2, b2, w3, b3)
    assert out_a.shape == (3, num_classes)
    assert jnp.allclose(out_a, ref_a, atol=1e-2, rtol=1e-2)

    # Case 2: larger batch, default block_m -> tile halved so grid has 2 "parallel"
    #   steps (exercises the dual-TensorCore sharding path, no batch padding).
    x_b = jax.random.normal(kx2, (5, 4, 8, 32), jnp.float32)   # -> 160 rows of 32
    out_b = genre_classifier_forward(x_b, w1, b1, w2, b2, w3, b3)
    out_b = jax.block_until_ready(out_b)
    ref_b = _reference(x_b, w1, b1, w2, b2, w3, b3)
    assert out_b.shape == (160, num_classes)
    assert jnp.allclose(out_b, ref_b, atol=1e-2, rtol=1e-2)

    # Case 3: explicit small tile that does not divide the batch
    #   (exercises the multi-step grid + zero-pad path).
    out_c = genre_classifier_forward(x_b, w1, b1, w2, b2, w3, b3, block_m=48)
    out_c = jax.block_until_ready(out_c)
    assert out_c.shape == (160, num_classes)
    assert jnp.allclose(out_c, ref_b, atol=1e-2, rtol=1e-2)

    print("KERNEL_OK")
</pallas_src>

<mosaic_0001>
module attributes {stable_mosaic.version = 11 : i64} {
  func.func @_mlp_kernel(%arg0: i32, %arg1: memref<16x32xf32, #tpu.memory_space<vmem>>, %arg2: memref<32x128xbf16, #tpu.memory_space<vmem>>, %arg3: memref<1x128xf32, #tpu.memory_space<vmem>>, %arg4: memref<128x64xbf16, #tpu.memory_space<vmem>>, %arg5: memref<1x64xf32, #tpu.memory_space<vmem>>, %arg6: memref<64x16xbf16, #tpu.memory_space<vmem>>, %arg7: memref<1x16xf32, #tpu.memory_space<vmem>>, %arg8: memref<16x16xbf16, #tpu.memory_space<vmem>>) attributes {dimension_semantics = [#tpu.dimension_semantics<parallel>], iteration_bounds = array<i64: 1>, scalar_prefetch = 0 : i64, scratch_operands = 0 : i64, tpu.core_type = #tpu.core_type<tc>, window_params = [{transform_indices = @transform_0, window_bounds = array<i64: 16, 32>}, {pipeline_mode = #tpu.pipeline_mode<synchronous>, transform_indices = @transform_1, window_bounds = array<i64: 32, 128>}, {pipeline_mode = #tpu.pipeline_mode<synchronous>, transform_indices = @transform_2, window_bounds = array<i64: 1, 128>}, {pipeline_mode = #tpu.pipeline_mode<synchronous>, transform_indices = @transform_3, window_bounds = array<i64: 128, 64>}, {pipeline_mode = #tpu.pipeline_mode<synchronous>, transform_indices = @transform_4, window_bounds = array<i64: 1, 64>}, {pipeline_mode = #tpu.pipeline_mode<synchronous>, transform_indices = @transform_5, window_bounds = array<i64: 64, 16>}, {pipeline_mode = #tpu.pipeline_mode<synchronous>, transform_indices = @transform_6, window_bounds = array<i64: 1, 16>}, {transform_indices = @transform_7, window_bounds = array<i64: 16, 16>}]} {
    %c0 = arith.constant 0 : index
    %c0_0 = arith.constant 0 : index
    %0 = vector.load %arg1[%c0, %c0_0] : memref<16x32xf32, #tpu.memory_space<vmem>>, vector<16x32xf32>
    %1 = arith.truncf %0 : vector<16x32xf32> to vector<16x32xbf16>
    %c0_1 = arith.constant 0 : index
    %c0_2 = arith.constant 0 : index
    %2 = vector.load %arg2[%c0_1, %c0_2] : memref<32x128xbf16, #tpu.memory_space<vmem>>, vector<32x128xbf16>
    %cst = arith.constant dense<0.000000e+00> : vector<16x128xf32>
    %3 = tpu.matmul %1, %2, %cst {dimension_numbers = #tpu.dot_dimension_numbers<[1], [0], [0], [1], [0, 0, 1, 1], [], []>} : vector<16x32xbf16>, vector<32x128xbf16>, vector<16x128xf32> -> vector<16x128xf32>
    %c0_3 = arith.constant 0 : index
    %c0_4 = arith.constant 0 : index
    %4 = vector.load %arg3[%c0_3, %c0_4] : memref<1x128xf32, #tpu.memory_space<vmem>>, vector<1x128xf32>
    %5 = vector.broadcast %4 : vector<1x128xf32> to vector<16x128xf32>
    %6 = arith.addf %3, %5 : vector<16x128xf32>
    %cst_5 = arith.constant 0.000000e+00 : f32
    %7 = vector.broadcast %cst_5 : f32 to vector<16x128xf32>
    %8 = arith.maximumf %6, %7 : vector<16x128xf32>
    %9 = arith.truncf %8 : vector<16x128xf32> to vector<16x128xbf16>
    %c0_6 = arith.constant 0 : index
    %c0_7 = arith.constant 0 : index
    %10 = vector.load %arg4[%c0_6, %c0_7] : memref<128x64xbf16, #tpu.memory_space<vmem>>, vector<128x64xbf16>
    %cst_8 = arith.constant dense<0.000000e+00> : vector<16x64xf32>
    %11 = tpu.matmul %9, %10, %cst_8 {dimension_numbers = #tpu.dot_dimension_numbers<[1], [0], [0], [1], [0, 0, 1, 1], [], []>} : vector<16x128xbf16>, vector<128x64xbf16>, vector<16x64xf32> -> vector<16x64xf32>
    %c0_9 = arith.constant 0 : index
    %c0_10 = arith.constant 0 : index
    %12 = vector.load %arg5[%c0_9, %c0_10] : memref<1x64xf32, #tpu.memory_space<vmem>>, vector<1x64xf32>
    %13 = vector.broadcast %12 : vector<1x64xf32> to vector<16x64xf32>
    %14 = arith.addf %11, %13 : vector<16x64xf32>
    %cst_11 = arith.constant 0.000000e+00 : f32
    %15 = vector.broadcast %cst_11 : f32 to vector<16x64xf32>
    %16 = arith.maximumf %14, %15 : vector<16x64xf32>
    %17 = arith.truncf %16 : vector<16x64xf32> to vector<16x64xbf16>
    %c0_12 = arith.constant 0 : index
    %c0_13 = arith.constant 0 : index
    %18 = vector.load %arg6[%c0_12, %c0_13] : memref<64x16xbf16, #tpu.memory_space<vmem>>, vector<64x16xbf16>
    %cst_14 = arith.constant dense<0.000000e+00> : vector<16x16xf32>
    %19 = tpu.matmul %17, %18, %cst_14 {dimension_numbers = #tpu.dot_dimension_numbers<[1], [0], [0], [1], [0, 0, 1, 1], [], []>} : vector<16x64xbf16>, vector<64x16xbf16>, vector<16x16xf32> -> vector<16x16xf32>
    %c0_15 = arith.constant 0 : index
    %c0_16 = arith.constant 0 : index
    %20 = vector.load %arg7[%c0_15, %c0_16] : memref<1x16xf32, #tpu.memory_space<vmem>>, vector<1x16xf32>
    %21 = vector.broadcast %20 : vector<1x16xf32> to vector<16x16xf32>
    %22 = arith.addf %19, %21 : vector<16x16xf32>
    %23 = arith.truncf %22 : vector<16x16xf32> to vector<16x16xbf16>
    %c0_17 = arith.constant 0 : index
    %c0_18 = arith.constant 0 : index
    %24 = vector.load %arg8[%c0_17, %c0_18] : memref<16x16xbf16, #tpu.memory_space<vmem>>, vector<16x16xbf16>
    tpu.vector_store %arg8[%c0_17, %c0_18], %23 {strides = array<i32>} : memref<16x16xbf16, #tpu.memory_space<vmem>>, vector<16x16xbf16>,
    return
  }
  func.func @transform_0(%arg0: i32) -> (i32, i32) {
    %c0_i32 = arith.constant 0 : i32
    %c0_i32_0 = arith.constant 0 : i32
    return %arg0, %c0_i32 : i32, i32
  }
  func.func @transform_1(%arg0: i32) -> (i32, i32) {
    %c0_i32 = arith.constant 0 : i32
    %c0_i32_0 = arith.constant 0 : i32
    %c0_i32_1 = arith.constant 0 : i32
    return %c0_i32, %c0_i32_0 : i32, i32
  }
  func.func @transform_2(%arg0: i32) -> (i32, i32) {
    %c0_i32 = arith.constant 0 : i32
    %c0_i32_0 = arith.constant 0 : i32
    %c0_i32_1 = arith.constant 0 : i32
    return %c0_i32, %c0_i32_0 : i32, i32
  }
  func.func @transform_3(%arg0: i32) -> (i32, i32) {
    %c0_i32 = arith.constant 0 : i32
    %c0_i32_0 = arith.constant 0 : i32
    %c0_i32_1 = arith.constant 0 : i32
    return %c0_i32, %c0_i32_0 : i32, i32
  }
  func.func @transform_4(%arg0: i32) -> (i32, i32) {
    %c0_i32 = arith.constant 0 : i32
    %c0_i32_0 = arith.constant 0 : i32
    %c0_i32_1 = arith.constant 0 : i32
    return %c0_i32, %c0_i32_0 : i32, i32
  }
  func.func @transform_5(%arg0: i32) -> (i32, i32) {
    %c0_i32 = arith.constant 0 : i32
    %c0_i32_0 = arith.constant 0 : i32
    %c0_i32_1 = arith.constant 0 : i32
    return %c0_i32, %c0_i32_0 : i32, i32
  }
  func.func @transform_6(%arg0: i32) -> (i32, i32) {
    %c0_i32 = arith.constant 0 : i32
    %c0_i32_0 = arith.constant 0 : i32
    %c0_i32_1 = arith.constant 0 : i32
    return %c0_i32, %c0_i32_0 : i32, i32
  }
  func.func @transform_7(%arg0: i32) -> (i32, i32) {
    %c0_i32 = arith.constant 0 : i32
    %c0_i32_0 = arith.constant 0 : i32
    return %arg0, %c0_i32 : i32, i32
  }
}

</mosaic_0001>

<bundles_post_ra>
// kernel: genre_classifier_forward.1
= control target key start
LH: loop header
LB: loop body
LE: loop exit
PB: predicated region body
PF: predicated region fallthrough
CT: control target
= control target key end

     0   :  { %vm50_vm0 = vcmask 261120   ;;  %vm192_vm1 = vcmask 523264   ;;  %vm212_vm2 = vcmask 125952   ;;  %s397_s1 = inlined_call_operand.vmem [shape: bf16[32,128], index: 1, kind: input, shape index: {}]   ;;  %s398_s0 = inlined_call_operand.vmem [shape: f32[16,32], index: 0, kind: input, shape index: {}]   ;;  %s399_s3 = inlined_call_operand.vmem [shape: bf16[128,64], index: 3, kind: input, shape index: {}]   ;;  %s400_s2 = inlined_call_operand.vmem [shape: f32[1,128], index: 2, kind: input, shape index: {}]   ;;  %s401_s4 = inlined_call_operand.vmem [shape: f32[1,64], index: 4, kind: input, shape index: {}]   ;;  %s402_s6 = inlined_call_operand.vmem [shape: f32[1,16], index: 6, kind: input, shape index: {}]   ;;  %s403_s5 = inlined_call_operand.vmem [shape: bf16[64,16], index: 5, kind: input, shape index: {}]   ;;  %s404_s7 = inlined_call_operand.vmem [shape: bf16[16,16], index: 7, kind: output, shape index: {}]  }
   0x1   :  { %v278_v0 = vld [vmem:[%s397_s1 + $0x8] sm:$0xff]  ;;  %v277_v1 = vld [vmem:[%s397_s1] sm:$0xff]  ;;  %v286_v2 = vld [vmem:[%s399_s3 + $0x38] sm:$0xff] }
   0x2   :  { %60 = vmatpush.bf16.msra.mxu0 %v278_v0  ;;  %v27_v3 = vld [vmem:[%s398_s0] sm:$0xff]  ;;  %v28_v4 = vld [vmem:[%s398_s0 + $0x8] sm:$0xff]  ;;  %139 = vmatpush.bf16.msra.mxu1 %v286_v2  ;;  %v285_v5 = vld [vmem:[%s399_s3 + $0x30] sm:$0xff] }
   0x3   :  { %v29_v6 = vpack.c.bf16 %v28_v4, %v27_v3  ;;  %v284_v7 = vld [vmem:[%s399_s3 + $0x28] sm:$0xff]  ;;  %v283_v8 = vld [vmem:[%s399_s3 + $0x20] sm:$0xff]  ;;  %v282_v9 = vld [vmem:[%s399_s3 + $0x18] sm:$0xff] }
   0x4   :  { %v281_v10 = vld [vmem:[%s399_s3 + $0x10] sm:$0xff]  ;;  %v280_v11 = vld [vmem:[%s399_s3 + $0x8] sm:$0xff]  ;;  %v279_v12 = vld [vmem:[%s399_s3] sm:$0xff] }
   0x5   :  { %v291_v14 = vld [vmem:[%s400_s2] ss:$0 sm:$0xff]  ;;  %v290_v21 = vld [vmem:[%s403_s5 + $0x18] sm:$0xff]  ;;  %v289_v22 = vld [vmem:[%s403_s5 + $0x10] sm:$0xff] }
   0x6   :  { %61 = vmatpush.bf16.msra.mxu0 %v277_v1  ;;  %140 = vmatpush.bf16.msra.mxu1 %v285_v5  ;;  %v288_v23 = vld [vmem:[%s403_s5 + $0x8] sm:$0xff]  ;;  %v287_v24 = vld [vmem:[%s403_s5] sm:$0xff] }
   0x7   :  { %200 = vmatpush.bf16.msra.mxu2 %v290_v21  ;;  %v292_v26 = vld [vmem:[%s401_s4] ss:$0 sm:$0xff] }
   0x8   :  { %v293_v33 = vld [vmem:[%s402_s6] ss:$0 sm:$0xff] }
   0x9   :  { %227 = vmatmul.msk.bf16.vlgmr.msra.gmra.mxu0 %vm50_vm0, %v29_v6 }
   0xa   :  { %141 = vmatpush.bf16.msra.mxu1 %v284_v7 }
   0xb   :  { %201 = vmatpush.bf16.msra.mxu2 %v289_v22 }
   0xe   :  { %142 = vmatpush.bf16.msra.mxu1 %v283_v8 }
   0xf   :  { %202 = vmatpush.bf16.msra.mxu2 %v288_v23 }
  0x12   :  { %143 = vmatpush.bf16.msra.mxu1 %v282_v9 }
  0x13   :  { %203 = vmatpush.bf16.msra.mxu2 %v287_v24 }
  0x16   :  { %144 = vmatpush.bf16.msra.mxu1 %v281_v10 }
  0x1a   :  { %145 = vmatpush.bf16.msra.mxu1 %v280_v11 }
  0x1e   :  { %146 = vmatpush.bf16.msra.mxu1 %v279_v12 }
  0x86   :  { %v63_v13 = vpop.f32.mrf.mxu0 }
  0x87   :  { %v64_v15 = vadd.f32 %v291_v14, %v63_v13 }
  0x89   :  { %v68_v18 = vmax.f32 %v64_v15, 0.0 }
  0x8e   :  { %v65_v16 = vpop.f32.mrf.mxu0 }
  0x8f   :  { %v66_v17 = vadd.f32 %v291_v14, %v65_v16 }
  0x91   :  { %v69_v19 = vmax.f32 %v66_v17, 0.0 }
  0x93   :  { %v70_v20 = vpack.c.bf16 %v69_v19, %v68_v18 }
  0x95   :  { %147 = vmatmul.bf16.vlgmr.msra.gmra.mxu1 %v70_v20 }
 0x112   :  { %v148_v25 = vpop.f32.mrf.mxu1 }
 0x113   :  { %v149_v27 = vadd.f32 %v292_v26, %v148_v25 }
 0x115   :  { %v153_v30 = vmax.f32 %v149_v27, 0.0 }
 0x11a   :  { %v150_v28 = vpop.f32.mrf.mxu1 }
 0x11b   :  { %v151_v29 = vadd.f32 %v292_v26, %v150_v28 }
 0x11d   :  { %v154_v31 = vmax.f32 %v151_v29, 0.0 }
 0x11f   :  { %v155_v32 = vpack.c.bf16 %v154_v31, %v153_v30 }
 0x121   :  { %276 = vmatmul.msk.bf16.vlgmr.msra.gmra.mxu2 %vm192_vm1, %v155_v32 }
 0x1a4   :  { %v205_v34 = vpop.f32.mrf.mxu2 }
 0x1a5   :  { %v206_v35 = vadd.f32 %v293_v33, %v205_v34 }
 0x1a7   :  { %v210_v36 = vpack.c.bf16 %v206_v35, %v206_v35 }
 0x1a9   :  { %213 = vst.msk [vmem:[%s404_s7] sm:$0xf] %vm212_vm2, %v210_v36 }
 0x1ac   :  { %v207_v37 = vpop.f32.mrf.mxu2 }
 0x1ad   :  { %v208_v38 = vadd.f32 %v293_v33, %v207_v37 }
 0x1af   :  { %v211_v39 = vpack.c.bf16 %v208_v38, %v208_v38 }
 0x1b1   :  { %214 = vst.msk [vmem:[%s404_s7 + $0x4] sm:$0xf] %vm212_vm2, %v211_v39 }

</bundles_post_ra>
